<compile_context>
chip_gen: v7x
topology: tpu7x:2x2x1
jax: 0.10.0
libtpu: 0.0.40
codegen_flags: <defaults>
</compile_context>

<pallas_src>
import math

import jax
import jax.numpy as jnp
from jax.experimental import pallas as pl
from jax.experimental.pallas import tpu as pltpu


def _pe_copy_kernel(pe_ref, out_ref):
    # pe_ref : VMEM (TILE_S, D) block of the sinusoidal table (rows i*TILE_S ..)
    # out_ref: VMEM (TILE_S, D) block of the output
    # Positions are the identity sequence, so output block i == table block i:
    # a single unmasked bulk copy per grid step (no scalar loop, no masked stores).
    out_ref[...] = pe_ref[...]


def _round_up(v: int, m: int) -> int:
    return ((v + m - 1) // m) * m


class PositionalEncoding:
    def __init__(self, model_dim: int, padding_idx: int, max_len: int = 1024):
        # padding_idx is accepted but unused, matching the torch module's forward.
        self.padding_idx = padding_idx
        self.model_dim = model_dim
        self.max_len = max_len

        # Deterministic buffer construction, identical to the torch __init__.
        position = jnp.arange(0, max_len, dtype=jnp.float32)[:, None]          # (max_len, 1)
        div_term = jnp.exp(
            jnp.arange(0, model_dim, 2, dtype=jnp.float32)
            * -(math.log(10000.0) / model_dim)
        )                                                                       # (model_dim//2,)
        pe = jnp.zeros((max_len, model_dim), dtype=jnp.float32)
        pe = pe.at[:, 0::2].set(jnp.sin(position * div_term))
        pe = pe.at[:, 1::2].set(jnp.cos(position * div_term))
        self.pos_emb = pe                                                       # (max_len, model_dim)
        self.position_ids = jnp.arange(max_len, dtype=jnp.int32)[:, None]       # (max_len, 1)

    def __call__(self, x: jax.Array, *, tile_s: int | None = None) -> jax.Array:
        S, B = x.shape  # B is unused by the torch forward as well
        D = self.model_dim

        if tile_s is None:
            # Target >= 512-row tiles (v6e roofline sweet spot) but cap the
            # double-buffered footprint (2 specs x 2 buffers x tile bytes) so it
            # stays under v5e's 16 MiB scoped VMEM default and leaves headroom on
            # v7x's smaller VMEM.
            budget_rows = (8 * 1024 * 1024) // (4 * 4 * D)       # 4 buffers * 4 B/elem
            tile_s = max(8, min(512, (budget_rows // 8) * 8))
        # Never fetch more rows than needed; keep the sublane-aligned (x8) shape.
        tile_s = min(tile_s, _round_up(S, 8))

        grid = (pl.cdiv(S, tile_s),)

        gathered = pl.pallas_call(
            _pe_copy_kernel,
            out_shape=jax.ShapeDtypeStruct((S, D), jnp.float32),
            grid_spec=pltpu.PrefetchScalarGridSpec(
                num_scalar_prefetch=0,
                grid=grid,
                # Only the row blocks covering rows 0..S-1 are ever DMA'd;
                # the rest of the (max_len, D) table never leaves HBM.
                in_specs=[pl.BlockSpec((tile_s, D), lambda i: (i, 0))],
                out_specs=pl.BlockSpec((tile_s, D), lambda i: (i, 0)),
            ),
            compiler_params=pltpu.CompilerParams(
                # Independent row blocks -> shard across both TensorCores on v7x.
                dimension_semantics=("parallel",),
            ),
        )(self.pos_emb)

        # torch indexing with an (S, 1) index tensor yields (S, 1, model_dim).
        return gathered[:, None, :]


if __name__ == "__main__":
    key = jax.random.PRNGKey(0)

    # Config 1: lane-dense feature dim (model_dim multiple of 128), single block.
    S, B, model_dim, max_len = 16, 2, 128, 64
    x = jax.random.randint(key, (S, B), minval=0, maxval=100, dtype=jnp.int32)
    module = PositionalEncoding(model_dim=model_dim, padding_idx=0, max_len=max_len)
    out = jax.block_until_ready(module(x))
    ref = module.pos_emb[module.position_ids[:S, :]]  # (S, 1, model_dim) pure-JAX reference
    assert out.shape == (S, 1, model_dim), out.shape
    assert out.dtype == jnp.float32
    assert jnp.array_equal(out, ref)

    # Config 2: small feature dim (D < 128) + multi-block pipelined grid.
    S2, B2, model_dim2, max_len2 = 24, 2, 32, 64
    x2 = jax.random.randint(jax.random.PRNGKey(0), (S2, B2), minval=0, maxval=100,
                            dtype=jnp.int32)
    module2 = PositionalEncoding(model_dim=model_dim2, padding_idx=0, max_len=max_len2)
    out2 = jax.block_until_ready(module2(x2, tile_s=8))
    ref2 = module2.pos_emb[module2.position_ids[:S2, :]]
    assert out2.shape == (S2, 1, model_dim2), out2.shape
    assert jnp.array_equal(out2, ref2)

    print("KERNEL_OK")
</pallas_src>

<mosaic_0001>
module attributes {stable_mosaic.version = 11 : i64} {
  func.func @_pe_copy_kernel(%arg0: i32, %arg1: memref<16x128xf32, #tpu.memory_space<vmem>>, %arg2: memref<16x128xf32, #tpu.memory_space<vmem>>) attributes {dimension_semantics = [#tpu.dimension_semantics<parallel>], iteration_bounds = array<i64: 1>, scalar_prefetch = 0 : i64, scratch_operands = 0 : i64, tpu.core_type = #tpu.core_type<tc>, window_params = [{transform_indices = @transform_0, window_bounds = array<i64: 16, 128>}, {transform_indices = @transform_1, window_bounds = array<i64: 16, 128>}]} {
    %c0 = arith.constant 0 : index
    %c0_0 = arith.constant 0 : index
    %0 = vector.load %arg1[%c0, %c0_0] : memref<16x128xf32, #tpu.memory_space<vmem>>, vector<16x128xf32>
    %c0_1 = arith.constant 0 : index
    %c0_2 = arith.constant 0 : index
    %1 = vector.load %arg2[%c0_1, %c0_2] : memref<16x128xf32, #tpu.memory_space<vmem>>, vector<16x128xf32>
    tpu.vector_store %arg2[%c0_1, %c0_2], %0 {strides = array<i32>} : memref<16x128xf32, #tpu.memory_space<vmem>>, vector<16x128xf32>,
    return
  }
  func.func @transform_0(%arg0: i32) -> (i32, i32) {
    %c0_i32 = arith.constant 0 : i32
    %c0_i32_0 = arith.constant 0 : i32
    return %arg0, %c0_i32 : i32, i32
  }
  func.func @transform_1(%arg0: i32) -> (i32, i32) {
    %c0_i32 = arith.constant 0 : i32
    %c0_i32_0 = arith.constant 0 : i32
    return %arg0, %c0_i32 : i32, i32
  }
}

</mosaic_0001>

<bundles_post_ra>
// kernel: tpu_custom_call.1
= control target key start
LH: loop header
LB: loop body
LE: loop exit
PB: predicated region body
PF: predicated region fallthrough
CT: control target
= control target key end

     0   :  { %6 = vsyncpa [#allocation3], 0  ;;  %s137_s0 = inlined_call_operand.hbm [shape: f32[64,128], index: 0, kind: input, shape index: {}]   ;;  %s138_s1 = inlined_call_operand.hbm [shape: f32[16,128], index: 1, kind: output, shape index: {}]  }
   0x1   :  { %7 = vsyncpa [#allocation4], 0  ;;  %s96_s6 = smov [#allocation2]   ;;  %s48_s10 = scalar_lea.hbm %s137_s0, 256 }
   0x2   :  { %s13_s7 = sshll.u32 %s96_s6, 4  ;;  %p49_p0 = scmp.ne.s32.totalorder %s137_s0, %s48_s10  ;;  %s14_s7 = int_to_ptr.vmem [resolvable:$true] %s13_s7 }
   0x3   :  { %s50_s15 = scalar_lea.hbm %s137_s0, 1024  ;;  %p52_p2 = scmp.lt.u32.totalorder %s48_s10, %s137_s0 }
   0x4   :  { %p51_p1 = scmp.lt.u32.totalorder %s50_s15, %s48_s10 }
   0x6   :  { %p53_p3 = por %p52_p2, %p51_p1 }
   0x8   :  { %p54_p4 = pnand %p53_p3, %p49_p0 }
   0xa   :  { %57 = shalt.err (!%p54_p4)
}
   0xb   :  { %s58_s18 = scalar_lea.vmem %s14_s7, 256  ;;  %p63_p6 = scmp.lt.s32.totalorder %s14_s7, %s14_s7 }
   0xc   :  { %p59_p5 = scmp.ne.s32.totalorder %s14_s7, %s58_s18  ;;  %p64_p7 = scmp.lt.s32.totalorder %s58_s18, %s58_s18 }
   0xe   :  { %p65_p8 = por %p64_p7, %p63_p6 }
  0x10   :  { %p66_p9 = pnand %p65_p8, %p59_p5 }
  0x12   :  { %69 = shalt.err (!%p66_p9)
}
  0x13   :  { %s97_s19 = smov 128   ;;  %s98_s20 = smov 8  }
  0x14   :  { %19 = dma.hbm_to_vmem [thread:$0]  %s137_s0, 256, %s14_s7, [#allocation3], %s97_s19, %s97_s19, %s98_s20  }
  0x15   :  { %92 = dma.done.wait [#allocation3], 256  }
  0x16   :  { %93 = vsyncadd [#allocation3], 4294967040  ;;  %s99_s23 = smov [#allocation5]   ;;  %v23_v0 = vld [vmem:[#allocation2] sm:$0xff]  ;;  %v24_v1 = vld [vmem:[#allocation2 + $0x8] sm:$0xff] }
  0x17   :  { %s32_s24 = sshll.u32 %s99_s23, 4  ;;  %25 = vst [vmem:[#allocation5] sm:$0xff] %v23_v0  ;;  %26 = vst [vmem:[#allocation5 + $0x8] sm:$0xff] %v24_v1  ;;  %s33_s24 = int_to_ptr.vmem [resolvable:$true] %s32_s24 }
  0x18   :  { %s70_s25 = scalar_lea.vmem %s33_s24, 256  ;;  %p75_p11 = scmp.lt.s32.totalorder %s33_s24, %s33_s24 }
  0x19   :  { %p71_p10 = scmp.ne.s32.totalorder %s33_s24, %s70_s25  ;;  %p76_p12 = scmp.lt.s32.totalorder %s70_s25, %s70_s25 }
  0x1b   :  { %p77_p13 = por %p76_p12, %p75_p11 }
  0x1d   :  { %p78_p0 = pnand %p77_p13, %p71_p10 }
  0x1f   :  { %81 = shalt.err (!%p78_p0)
}
  0x20   :  { %s82_s0 = scalar_lea.hbm %s138_s1, 256 }
  0x21   :  { %p83_p1 = scmp.ne.s32.totalorder %s138_s1, %s82_s0  ;;  %p86_p2 = scmp.lt.u32.totalorder %s82_s0, %s138_s1 }
  0x23   :  { %p88_p3 = pnand %p86_p2, %p83_p1 }
  0x25   :  { %91 = shalt.err (!%p88_p3)
}
  0x26   :  { %38 = dma.vmem_to_hbm [thread:$0]  %s33_s24, 256, %s138_s1, [#allocation4], %s97_s19, %s97_s19, %s98_s20  }
  0x27   :  { %94 = dma.done.wait [#allocation4], 256  }
  0x28   :  { %95 = vsyncadd [#allocation4], 4294967040 }
  0x29   :  { %42 = vsyncpa [#allocation3], 1 }
  0x2a   :  { %43 = vsyncpa [#allocation4], 1 }

</bundles_post_ra>
